<compile_context>
chip_gen: v7x
topology: tpu7x:2x2x1
jax: 0.10.0
libtpu: 0.0.40
codegen_flags: <defaults>
</compile_context>

<pallas_src>
import functools

import jax
import jax.numpy as jnp
from jax.experimental import pallas as pl
from jax.experimental.pallas import tpu as pltpu


# --------------------------------------------------------------------------
# Kernels
# --------------------------------------------------------------------------
def _ffn_kernel_resident(x_ref, w1_ref, b1_ref, w2_ref, b2_ref, o_ref):
    # Single hidden step: W1/W2 blocks have constant indices -> loaded once,
    # VMEM-resident across all row tiles. No accumulator scratch needed.
    # x_ref:  (rt, M_dim)   native dtype   -> cast to bf16 in-kernel (VPU slack)
    # w1_ref: (M_dim, H) bf16   b1_ref: (1, H)     f32
    # w2_ref: (H, M_dim) bf16   b2_ref: (1, M_dim) f32
    x = x_ref[...].astype(jnp.bfloat16)
    hid = jnp.dot(x, w1_ref[...], preferred_element_type=jnp.float32)
    hid = jnp.maximum(hid + b1_ref[...], 0.0)
    # dropout: identity (inference). TODO(synk): train-time dropout (p=0.1)
    # would mask/rescale `hid` here via pltpu.prng_random_bits.
    out = jnp.dot(hid.astype(jnp.bfloat16), w2_ref[...],
                  preferred_element_type=jnp.float32) + b2_ref[...]
    o_ref[...] = out.astype(o_ref.dtype)


def _ffn_kernel_streamed(x_ref, w1_ref, b1_ref, w2_ref, b2_ref, o_ref, acc_ref):
    # Hidden dim streamed in tiles (weights too big for VMEM residency).
    # grid = (row_tiles, hidden_tiles); acc_ref is resident across axis 1.
    h = pl.program_id(1)

    @pl.when(h == 0)
    def _():
        # Initialize accumulator with the second bias (added exactly once).
        acc_ref[...] = jnp.broadcast_to(
            b2_ref[...].astype(jnp.float32), acc_ref.shape)

    x = x_ref[...].astype(jnp.bfloat16)
    hid = jnp.dot(x, w1_ref[...], preferred_element_type=jnp.float32)
    hid = jnp.maximum(hid + b1_ref[...], 0.0)
    # dropout: identity (inference).
    acc_ref[...] += jnp.dot(hid.astype(jnp.bfloat16), w2_ref[...],
                            preferred_element_type=jnp.float32)

    @pl.when(h == pl.num_programs(1) - 1)
    def _():
        o_ref[...] = acc_ref[...].astype(o_ref.dtype)


# --------------------------------------------------------------------------
# Wrapper
# --------------------------------------------------------------------------
def _vmem_capacity_bytes():
    """Physical VMEM per TensorCore; conservative 64 MiB (v7x) fallback."""
    try:
        info = pltpu.get_tpu_info()
        cap = getattr(info, "vmem_capacity_bytes", None)
        if cap:
            return int(cap)
    except Exception:
        pass
    return 64 * 1024 * 1024


@functools.partial(jax.jit,
                   static_argnames=("row_tile", "hidden_tile", "out_dtype"))
def feed_forward(x, w1, b1, w2, b2, *, row_tile=256, hidden_tile=None,
                 out_dtype=None):
    """x: (..., M_dim) -> (..., M_dim).

    w1: (M_dim, hidden), w2: (hidden, M_dim) -- ideally already bf16 (the
        in-wrapper cast is then a no-op; avoids an HBM pass per call).
    row_tile:    max rows of flattened (batch*seq) per grid step (adaptive).
    hidden_tile: None = auto (weights VMEM-resident if they fit, else stream).
    out_dtype:   output dtype (default x.dtype); bf16 halves output HBM bytes.
    """
    orig_shape = x.shape
    M_dim = orig_shape[-1]
    hidden = w1.shape[1]
    out_dt = jnp.dtype(out_dtype) if out_dtype is not None else jnp.dtype(x.dtype)

    x2d = x.reshape(-1, M_dim)
    rows = x2d.shape[0]
    x_itemsize = jnp.dtype(x.dtype).itemsize
    out_itemsize = out_dt.itemsize

    # Sublane granularity for the row axis (covers x and output dtypes).
    sub = max(8, 32 // x_itemsize, 32 // out_itemsize)

    # Adaptive row tile: never larger than the (rounded-up) row count, and
    # aim for >= 2 row tiles so v7x's two TensorCores both get work.
    rows_rounded = pl.cdiv(rows, sub) * sub
    rt = max(sub, min(row_tile, rows_rounded))
    if rows_rounded // rt < 2 and rows_rounded >= 2 * sub:
        rt = pl.cdiv(rows_rounded // 2, sub) * sub
    padded_rows = pl.cdiv(rows, rt) * rt
    num_row_tiles = padded_rows // rt

    # Generation-aware VMEM budget (~80% of physical leaves Mosaic headroom:
    # ~51 MiB on v7x, ~102 MiB on v5e/v6e).
    vmem_limit = int(0.80 * _vmem_capacity_bytes())

    # bf16 weights (no-op if already bf16 -- preferred); f32 biases (v5e VPU
    # has no bf16 ALU, keep bias/ReLU math in f32).
    w1_bf = w1.astype(jnp.bfloat16)
    w2_bf = w2.astype(jnp.bfloat16)
    b1_2d = b1.reshape(1, hidden).astype(jnp.float32)
    b2_2d = b2.reshape(1, M_dim).astype(jnp.float32)

    # Pad rows only when needed; x stays in its native dtype (in-kernel cast).
    if padded_rows != rows:
        x2d = jnp.pad(x2d, ((0, padded_rows - rows), (0, 0)))

    def vmem_needed(th, with_acc):
        return (2 * rt * M_dim * x_itemsize          # x tiles (double-buffered)
                + 2 * M_dim * th * 2                 # w1 tiles (bf16)
                + 2 * th * M_dim * 2                 # w2 tiles (bf16)
                + 2 * (th + M_dim) * 4               # bias tiles (f32)
                + 2 * rt * M_dim * out_itemsize      # output tiles
                + (rt * M_dim * 4 if with_acc else 0)  # f32 accumulator
                + rt * th * 4                        # f32 hidden activations
                + rt * M_dim * 4)                    # f32 pre-store temp

    # Choose hidden tiling: fully resident if it fits the budget.
    if hidden_tile is None:
        if vmem_needed(hidden, with_acc=False) <= vmem_limit:
            th = hidden
        else:
            th = hidden
            for cand in (512, 384, 256, 128):
                if hidden % cand == 0 and vmem_needed(cand, True) <= vmem_limit:
                    th = cand
                    break
    else:
        th = min(hidden_tile, hidden)
    assert hidden % th == 0, "hidden must be divisible by hidden_tile"
    assert th == hidden or th % 128 == 0, "hidden_tile must be a multiple of 128"
    # TODO(synk): for M_dim < 128 the output is lane-sparse (masked vst); fold
    # rows into the lane axis in the wrapper for such configs.

    if th == hidden:
        # ---- Weight-resident, single-pass path -----------------------------
        cost = pl.CostEstimate(
            flops=4 * padded_rows * M_dim * hidden,
            transcendentals=0,
            bytes_accessed=(padded_rows * M_dim * x_itemsize     # x
                            + 2 * M_dim * hidden * 2             # w1 + w2 once
                            + (hidden + M_dim) * 4               # biases
                            + padded_rows * M_dim * out_itemsize))
        out = pl.pallas_call(
            _ffn_kernel_resident,
            out_shape=jax.ShapeDtypeStruct((padded_rows, M_dim), out_dt),
            grid_spec=pltpu.PrefetchScalarGridSpec(
                num_scalar_prefetch=0,
                grid=(num_row_tiles,),
                in_specs=[
                    pl.BlockSpec((rt, M_dim), lambda i: (i, 0)),       # x
                    pl.BlockSpec((M_dim, hidden), lambda i: (0, 0)),   # w1 (resident)
                    pl.BlockSpec((1, hidden), lambda i: (0, 0)),       # b1
                    pl.BlockSpec((hidden, M_dim), lambda i: (0, 0)),   # w2 (resident)
                    pl.BlockSpec((1, M_dim), lambda i: (0, 0)),        # b2
                ],
                out_specs=pl.BlockSpec((rt, M_dim), lambda i: (i, 0)),
            ),
            compiler_params=pltpu.CompilerParams(
                dimension_semantics=("parallel",),
                vmem_limit_bytes=vmem_limit),
            cost_estimate=cost,
        )(x2d, w1_bf, b1_2d, w2_bf, b2_2d)
    else:
        # ---- Hidden-streaming path (weights too big for VMEM) --------------
        grid = (num_row_tiles, hidden // th)
        cost = pl.CostEstimate(
            flops=4 * padded_rows * M_dim * hidden,
            transcendentals=0,
            bytes_accessed=(padded_rows * M_dim * x_itemsize
                            + num_row_tiles * 2 * M_dim * hidden * 2  # re-streamed
                            + (hidden + M_dim) * 4
                            + padded_rows * M_dim * out_itemsize))
        out = pl.pallas_call(
            _ffn_kernel_streamed,
            out_shape=jax.ShapeDtypeStruct((padded_rows, M_dim), out_dt),
            grid_spec=pltpu.PrefetchScalarGridSpec(
                num_scalar_prefetch=0,
                grid=grid,
                in_specs=[
                    pl.BlockSpec((rt, M_dim), lambda i, h: (i, 0)),    # x
                    pl.BlockSpec((M_dim, th), lambda i, h: (0, h)),    # w1
                    pl.BlockSpec((1, th), lambda i, h: (0, h)),        # b1
                    pl.BlockSpec((th, M_dim), lambda i, h: (h, 0)),    # w2
                    pl.BlockSpec((1, M_dim), lambda i, h: (0, 0)),     # b2
                ],
                out_specs=pl.BlockSpec((rt, M_dim), lambda i, h: (i, 0)),
                scratch_shapes=[pltpu.VMEM((rt, M_dim), jnp.float32)],
            ),
            compiler_params=pltpu.CompilerParams(
                dimension_semantics=("parallel", "arbitrary"),
                vmem_limit_bytes=vmem_limit),
            cost_estimate=cost,
        )(x2d, w1_bf, b1_2d, w2_bf, b2_2d)

    return out[:rows].reshape(orig_shape[:-1] + (M_dim,)).astype(out_dt)


def init_feed_forward_params(key, M_dim, mult=4, dtype=jnp.float32):
    """nn.Linear-style init (U[-1/sqrt(fan_in), 1/sqrt(fan_in)]);
    weights stored as (in_features, out_features)."""
    hidden = M_dim * mult
    k1, k2, k3, k4 = jax.random.split(key, 4)
    bound1 = 1.0 / jnp.sqrt(M_dim)
    bound2 = 1.0 / jnp.sqrt(hidden)
    w1 = jax.random.uniform(k1, (M_dim, hidden), dtype, -bound1, bound1)
    b1 = jax.random.uniform(k2, (hidden,), dtype, -bound1, bound1)
    w2 = jax.random.uniform(k3, (hidden, M_dim), dtype, -bound2, bound2)
    b2 = jax.random.uniform(k4, (M_dim,), dtype, -bound2, bound2)
    return w1, b1, w2, b2


if __name__ == "__main__":
    key = jax.random.PRNGKey(0)
    kx, kp = jax.random.split(key)

    # Small but lane-dense demo shape: M_dim=128 (>= lane width), hidden=512.
    batch, seq, M_dim, mult = 2, 8, 128, 4
    x = jax.random.normal(kx, (batch, seq, M_dim), jnp.float32)
    w1, b1, w2, b2 = init_feed_forward_params(kp, M_dim, mult)

    # Store weights as bf16 ONCE, outside the hot path (avoids a full HBM
    # read+write cast pass over both weight matrices per forward call).
    w1_bf = w1.astype(jnp.bfloat16)
    w2_bf = w2.astype(jnp.bfloat16)

    y = feed_forward(x, w1_bf, b1, w2_bf, b2)
    jax.block_until_ready(y)
    assert y.shape == (batch, seq, M_dim)

    # Pure-JAX reference with the same bf16-matmul / f32-accumulate recipe.
    xb = x.reshape(-1, M_dim).astype(jnp.bfloat16)
    h_ref = jnp.maximum(
        jnp.dot(xb, w1_bf, preferred_element_type=jnp.float32) + b1, 0.0)
    ref = jnp.dot(h_ref.astype(jnp.bfloat16), w2_bf,
                  preferred_element_type=jnp.float32) + b2
    ref = ref.reshape(batch, seq, M_dim).astype(x.dtype)
    assert jnp.allclose(y, ref, atol=2e-3, rtol=2e-3), (
        float(jnp.max(jnp.abs(y - ref))))

    print("KERNEL_OK")
</pallas_src>

<mosaic_0001>
module attributes {stable_mosaic.version = 11 : i64} {
  func.func @_ffn_kernel_resident(%arg0: i32, %arg1: memref<8x128xf32, #tpu.memory_space<vmem>>, %arg2: memref<128x512xbf16, #tpu.memory_space<vmem>>, %arg3: memref<1x512xf32, #tpu.memory_space<vmem>>, %arg4: memref<512x128xbf16, #tpu.memory_space<vmem>>, %arg5: memref<1x128xf32, #tpu.memory_space<vmem>>, %arg6: memref<8x128xf32, #tpu.memory_space<vmem>>) attributes {dimension_semantics = [#tpu.dimension_semantics<parallel>], iteration_bounds = array<i64: 2>, scalar_prefetch = 0 : i64, scratch_operands = 0 : i64, tpu.core_type = #tpu.core_type<tc>, window_params = [{transform_indices = @transform_0, window_bounds = array<i64: 8, 128>}, {pipeline_mode = #tpu.pipeline_mode<synchronous>, transform_indices = @transform_1, window_bounds = array<i64: 128, 512>}, {pipeline_mode = #tpu.pipeline_mode<synchronous>, transform_indices = @transform_2, window_bounds = array<i64: 1, 512>}, {pipeline_mode = #tpu.pipeline_mode<synchronous>, transform_indices = @transform_3, window_bounds = array<i64: 512, 128>}, {pipeline_mode = #tpu.pipeline_mode<synchronous>, transform_indices = @transform_4, window_bounds = array<i64: 1, 128>}, {transform_indices = @transform_5, window_bounds = array<i64: 8, 128>}]} {
    %c0 = arith.constant 0 : index
    %c0_0 = arith.constant 0 : index
    %0 = vector.load %arg1[%c0, %c0_0] : memref<8x128xf32, #tpu.memory_space<vmem>>, vector<8x128xf32>
    %1 = arith.truncf %0 : vector<8x128xf32> to vector<8x128xbf16>
    %c0_1 = arith.constant 0 : index
    %c0_2 = arith.constant 0 : index
    %2 = vector.load %arg2[%c0_1, %c0_2] : memref<128x512xbf16, #tpu.memory_space<vmem>>, vector<128x512xbf16>
    %cst = arith.constant dense<0.000000e+00> : vector<8x512xf32>
    %3 = tpu.matmul %1, %2, %cst {dimension_numbers = #tpu.dot_dimension_numbers<[1], [0], [0], [1], [0, 0, 1, 1], [], []>} : vector<8x128xbf16>, vector<128x512xbf16>, vector<8x512xf32> -> vector<8x512xf32>
    %c0_3 = arith.constant 0 : index
    %c0_4 = arith.constant 0 : index
    %4 = vector.load %arg3[%c0_3, %c0_4] : memref<1x512xf32, #tpu.memory_space<vmem>>, vector<1x512xf32>
    %5 = vector.broadcast %4 : vector<1x512xf32> to vector<8x512xf32>
    %6 = arith.addf %3, %5 : vector<8x512xf32>
    %cst_5 = arith.constant 0.000000e+00 : f32
    %7 = vector.broadcast %cst_5 : f32 to vector<8x512xf32>
    %8 = arith.maximumf %6, %7 : vector<8x512xf32>
    %9 = arith.truncf %8 : vector<8x512xf32> to vector<8x512xbf16>
    %c0_6 = arith.constant 0 : index
    %c0_7 = arith.constant 0 : index
    %10 = vector.load %arg4[%c0_6, %c0_7] : memref<512x128xbf16, #tpu.memory_space<vmem>>, vector<512x128xbf16>
    %cst_8 = arith.constant dense<0.000000e+00> : vector<8x128xf32>
    %11 = tpu.matmul %9, %10, %cst_8 {dimension_numbers = #tpu.dot_dimension_numbers<[1], [0], [0], [1], [0, 0, 1, 1], [], []>} : vector<8x512xbf16>, vector<512x128xbf16>, vector<8x128xf32> -> vector<8x128xf32>
    %c0_9 = arith.constant 0 : index
    %c0_10 = arith.constant 0 : index
    %12 = vector.load %arg5[%c0_9, %c0_10] : memref<1x128xf32, #tpu.memory_space<vmem>>, vector<1x128xf32>
    %13 = vector.broadcast %12 : vector<1x128xf32> to vector<8x128xf32>
    %14 = arith.addf %11, %13 : vector<8x128xf32>
    %c0_11 = arith.constant 0 : index
    %c0_12 = arith.constant 0 : index
    %15 = vector.load %arg6[%c0_11, %c0_12] : memref<8x128xf32, #tpu.memory_space<vmem>>, vector<8x128xf32>
    tpu.vector_store %arg6[%c0_11, %c0_12], %14 {strides = array<i32>} : memref<8x128xf32, #tpu.memory_space<vmem>>, vector<8x128xf32>,
    return
  }
  func.func @transform_0(%arg0: i32) -> (i32, i32) {
    %c0_i32 = arith.constant 0 : i32
    %c0_i32_0 = arith.constant 0 : i32
    return %arg0, %c0_i32 : i32, i32
  }
  func.func @transform_1(%arg0: i32) -> (i32, i32) {
    %c0_i32 = arith.constant 0 : i32
    %c0_i32_0 = arith.constant 0 : i32
    %c0_i32_1 = arith.constant 0 : i32
    return %c0_i32, %c0_i32_0 : i32, i32
  }
  func.func @transform_2(%arg0: i32) -> (i32, i32) {
    %c0_i32 = arith.constant 0 : i32
    %c0_i32_0 = arith.constant 0 : i32
    %c0_i32_1 = arith.constant 0 : i32
    return %c0_i32, %c0_i32_0 : i32, i32
  }
  func.func @transform_3(%arg0: i32) -> (i32, i32) {
    %c0_i32 = arith.constant 0 : i32
    %c0_i32_0 = arith.constant 0 : i32
    %c0_i32_1 = arith.constant 0 : i32
    return %c0_i32, %c0_i32_0 : i32, i32
  }
  func.func @transform_4(%arg0: i32) -> (i32, i32) {
    %c0_i32 = arith.constant 0 : i32
    %c0_i32_0 = arith.constant 0 : i32
    %c0_i32_1 = arith.constant 0 : i32
    return %c0_i32, %c0_i32_0 : i32, i32
  }
  func.func @transform_5(%arg0: i32) -> (i32, i32) {
    %c0_i32 = arith.constant 0 : i32
    %c0_i32_0 = arith.constant 0 : i32
    return %arg0, %c0_i32 : i32, i32
  }
}

</mosaic_0001>

<bundles_post_ra>
// kernel: feed_forward.1
= control target key start
LH: loop header
LB: loop body
LE: loop exit
PB: predicated region body
PF: predicated region fallthrough
CT: control target
= control target key end

     0   :  { %10 = vsyncpa [#allocation3], 0  ;;  %s1739_s0 = inlined_call_operand.hbm [shape: f32[16,128], index: 0, kind: input, shape index: {}]   ;;  %s1740_s1 = inlined_call_operand.hbm [shape: bf16[128,512], index: 1, kind: input, shape index: {}]   ;;  %s1741_s2 = inlined_call_operand.vmem [shape: f32[1,512], index: 2, kind: input, shape index: {}]   ;;  %s1742_s3 = inlined_call_operand.hbm [shape: bf16[512,128], index: 3, kind: input, shape index: {}]   ;;  %s1743_s4 = inlined_call_operand.vmem [shape: f32[1,128], index: 4, kind: input, shape index: {}]   ;;  %s1744_s5 = inlined_call_operand.hbm [shape: f32[16,128], index: 5, kind: output, shape index: {}]  }
   0x1   :  { %12 = vsyncpa [#allocation3 + $0x1], 0 }
   0x2   :  { %13 = vsyncpa [#allocation6], 0 }
   0x3   :  { %14 = vsyncpa [#allocation4], 0 }
   0x4   :  { %16 = vsyncpa [#allocation4 + $0x1], 0  ;;  %s1497_s18 = smov 0   ;;  %s1499_s19 = smov 0  }
   0x5   :  { %s1501_s20 = smov 0   ;;  %s1503_s21 = smov 0  }
   0x6 LB: > { %s1518_s22 = sadd.s32 4294967295, %s1456_s21   ;;  %s1023_s23 = sadd.s32 4294967294, %s1456_s21   ;;  %s1456_s21 = sphi %s1503_s21, %s1764_s21   ;;  %s1452_s20 = sphi %s1501_s20, %s1763_s20   ;;  %s1448_s19 = sphi %s1499_s19, %s1762_s19   ;;  %s1444_s18 = sphi %s1497_s18, %s1761_s18  }
   0x7   : > { %p42_p0 = scmp.ne.s32.totalorder %s1448_s19, %s1444_s18  ;;  %p1745_p1 = scmp.eq.s32.totalorder %s1518_s22, 0 }
   0x8   : > { %p156_p3 = scmp.eq.s32.totalorder %s1023_s23, 1  ;;  %p1024_p5 = scmp.ge.s32.totalorder %s1456_s21, 1 }
   0x9   : > { %p1527_p4 = por %p1745_p1, %p42_p0  ;;  %p163_p7 = scmp.lt.s32.totalorder %s1456_s21, 3 }
   0xa   : > { %p1532_p6 = por %p156_p3, %p42_p0  ;;  %s1458_s27 = smov [#allocation5]  }
   0xb   : > { %s1748_s24 = scalar_select %p1527_p4, 1, 0 }
   0xc   : > { %s1749_s25 = scalar_select %p1532_p6, 1, 0 }
   0xd   : > { %p1537_p8 = pnand %p1024_p5, %p163_p7  ;;  %s175_s28 = sshll.u32 %s1458_s27, 4  ;;  %s1541_s28 = int_to_ptr.vmem [resolvable:$true] %s175_s28 }
   0xe   : > { %s1459_s30 = smov [#allocation7]   ;;  %s1300_s9 = scalar_lea.hbm %s1740_s1, 4096 }
   0xf   : > { %p1160_p9 = pneg %p1537_p8  ;;  %s191_s6 = sshll.u32 %s1459_s30, 4  ;;  %s1552_s6 = int_to_ptr.vmem [resolvable:$true] %s191_s6 }
  0x10   : > { %p1301_p12 = scmp.ne.s32.totalorder %s1740_s1, %s1300_s9  ;;  %p1307_p5 = scmp.lt.u32.totalorder %s1300_s9, %s1740_s1 }
  0x11   : > { %p1548_p11 = pnand %p1160_p9, %p1745_p1 }
  0x13   : > { %p1302_p13 = pneg %p1548_p11 }
  0x15   : > { %p1303_p0 = pnand %p1302_p13, %p1301_p12 }
  0x17   : > { %p1304_p3 = pneg %p1303_p0 }
  0x19   : > { %p1309_p7 = pnand %p1307_p5, %p1304_p3 }
  0x1b   : > { %1312 = shalt.err (!%p1309_p7)
}
  0x1c   : > { %s1313_s14 = scalar_lea.vmem %s1541_s28, 4096  ;;  %p1321_p2 = scmp.lt.s32.totalorder %s1541_s28, %s1541_s28 }
  0x1d   : > { %p1314_p9 = scmp.ne.s32.totalorder %s1541_s28, %s1313_s14  ;;  %p1322_p12 = scmp.lt.s32.totalorder %s1313_s14, %s1313_s14 }
  0x1f   : > { %p1316_p10 = pnand %p1314_p9, %p1302_p13  ;;  %p1323_p0 = por %p1322_p12, %p1321_p2 }
  0x21   : > { %p1317_p1 = pneg %p1316_p10 }
  0x23   : > { %p1324_p6 = pnand %p1323_p0, %p1317_p1 }
  0x25   : > { %1327 = shalt.err (!%p1324_p6)
}
  0x26   : > { %s1460_s15 = smov 256   ;;  %s1461_s16 = smov 16  }
  0x27   : > { %1163 = dma.hbm_to_vmem [thread:$0]  (!%p1548_p11), %s1740_s1, 4096, %s1541_s28, [#allocation6], %s1460_s15, %s1460_s15, %s1461_s16  }
  0x28   : > { %s1328_s7 = scalar_lea.hbm %s1742_s3, 4096 }
  0x29   : > { %p1329_p2 = scmp.ne.s32.totalorder %s1742_s3, %s1328_s7  ;;  %p1335_p10 = scmp.lt.u32.totalorder %s1328_s7, %s1742_s3 }
  0x2b   : > { %p1331_p1 = pnand %p1329_p2, %p1302_p13 }
  0x2d   : > { %p1332_p6 = pneg %p1331_p1 }
  0x2f   : > { %p1337_p3 = pnand %p1335_p10, %p1332_p6 }
  0x31   : > { %1340 = shalt.err (!%p1337_p3)
}
  0x32   : > { %s1341_s28 = scalar_lea.vmem %s1552_s6, 4096  ;;  %p1349_p12 = scmp.lt.s32.totalorder %s1552_s6, %s1552_s6 }
  0x33   : > { %p1342_p5 = scmp.ne.s32.totalorder %s1552_s6, %s1341_s28  ;;  %p1350_p0 = scmp.lt.s32.totalorder %s1341_s28, %s1341_s28 }
  0x35   : > { %p1344_p7 = pnand %p1342_p5, %p1302_p13  ;;  %p1351_p2 = por %p1350_p0, %p1349_p12 }
  0x37   : > { %p1345_p9 = pneg %p1344_p7 }
  0x39   : > { %p1352_p1 = pnand %p1351_p2, %p1345_p9 }
  0x3b   : > { %1355 = shalt.err (!%p1352_p1)
}
  0x3c   : > { %s1462_s12 = smov 64   ;;  %s1463_s13 = smov 4  }
  0x3d   : > { %1166 = dma.hbm_to_vmem [thread:$0]  (!%p1548_p11), %s1742_s3, 4096, %s1552_s6, [#allocation6], %s1462_s12, %s1462_s12, %s1463_s13  }
  0x3e   : > { %s1607_s16 = sadd.s32 1, %s1456_s21   ;;  %s29_s23 = sadd.s32 1, %s1452_s20 }
  0x3f   : > { %s26_s17 = ssub.s32 %s1456_s21, %s1607_s16  ;;  %p36_p6 = scmp.ne.s32.totalorder %s1452_s20, %s1448_s19 }
  0x40   : > { %p27_p13 = scmp.eq.s32.totalorder %s26_s17, 0  ;;  %p37_p10 = scmp.eq.s32.totalorder %s1456_s21, 0 }
  0x41   : > { %p1752_p5 = scmp.eq.s32.totalorder %s1518_s22, 1  ;;  %p1177_p9 = scmp.lt.s32.totalorder %s1456_s21, 2 }
  0x42   : > { %s1616_s27 = scalar_select %p27_p13, %s1452_s20, %s29_s23  }
  0x43   : > { %p38_p3 = por %p37_p10, %p36_p6  ;;  %p1620_p7 = por %p1752_p5, %p36_p6 }
  0x44   : > { %s208_s29 = sand.u32 1, %s1452_s20   ;;  %s1029_s6 = sshll.u32 %s1456_s21, 7 }
  0x45   : > { %s1753_s30 = scalar_select %p1620_p7, 1, 0 }
  0x46   : > { %s1028_s7 = sshll.u32 %s208_s29, 3  ;;  %s1630_s10 = scalar_lea.hbm %s1739_s0, %s1029_s6 }
  0x47   : > { %s212_s11 = scalar_lea.vmem [#allocation2], %s1028_s7  ;;  %p1634_p11 = pnand %p1177_p9, %p38_p3 }
  0x48   : > { %s219_s28 = sshll.u32 %s212_s11, 4  ;;  %s209_s13 = scalar_lea.sflag [#allocation3], %s208_s29  ;;  %s1632_s28 = int_to_ptr.vmem [resolvable:$true] %s219_s28 }
  0x49   : > { %s1356_s14 = scalar_lea.hbm %s1630_s10, 128  ;;  %p1358_p0 = pneg %p1634_p11 }
  0x4a   : > { %p1357_p12 = scmp.ne.s32.totalorder %s1630_s10, %s1356_s14  ;;  %s1361_s23 = scalar_lea.hbm %s1739_s0, 256 }
  0x4b   : > { %p1362_p13 = scmp.lt.u32.totalorder %s1630_s10, %s1739_s0  ;;  %p1363_p6 = scmp.lt.u32.totalorder %s1361_s23, %s1356_s14 }
  0x4c   : > { %p1359_p2 = pnand %p1358_p0, %p1357_p12  ;;  %p1365_p3 = scmp.lt.u32.totalorder %s1356_s14, %s1630_s10 }
  0x4d   : > { %p1364_p10 = por %p1363_p6, %p1362_p13 }
  0x4e   : > { %p1360_p1 = pneg %p1359_p2 }
  0x4f   : > { %p1366_p5 = por %p1365_p3, %p1364_p10 }
  0x51   : > { %p1367_p9 = pnand %p1366_p5, %p1360_p1 }
  0x53   : > { %1370 = shalt.err (!%p1367_p9)
}
  0x54   : > { %s1371_s29 = scalar_lea.vmem %s1632_s28, 128  ;;  %s1464_s8 = smov [#allocation2]  }
  0x55   : > { %p1372_p12 = scmp.ne.s32.totalorder %s1632_s28, %s1371_s29  ;;  %s1376_s9 = sshll.u32 %s1464_s8, 4  ;;  %s1377_s9 = int_to_ptr.vmem [resolvable:$false] %s1376_s9 }
  0x56   : > { %s1378_s11 = scalar_lea.vmem %s1377_s9, 256  ;;  %p1379_p4 = scmp.lt.s32.totalorder %s1632_s28, %s1377_s9 }
  0x57   : > { %p1374_p2 = pnand %p1372_p12, %p1358_p0  ;;  %p1380_p13 = scmp.lt.s32.totalorder %s1378_s11, %s1371_s29 }
  0x59   : > { %p1375_p7 = pneg %p1374_p2  ;;  %p1381_p6 = por %p1380_p13, %p1379_p4 }
  0x5b   : > { %p1382_p10 = pnand %p1381_p6, %p1375_p7 }
  0x5d   : > { %1385 = shalt.err (!%p1382_p10)
}
  0x5e   : > { %1170 = dma.hbm_to_vmem [thread:$0]  (!%p1634_p11), %s1630_s10, 128, %s1632_s28, %s209_s13  }
  0x5f   : > { %228 = sbr.rel (%p1537_p8) target bundleno = 593 (0x251), region = 40  ;;  %s1666_s14 = sand.u32 (!%p1537_p8), 1, %s1448_s19  }
  0x60   : > { %s1031_s15 = sshll.u32 (!%p1537_p8), %s1666_s14, 3  ;;  %s231_s17 = scalar_lea.sflag (!%p1537_p8), [#allocation3], %s1666_s14 }
  0x61   : > { %s1672_s23 = scalar_lea.vmem (!%p1537_p8), [#allocation2], %s1031_s15  ;;  %p1755_p4 = scmp.ne.s32.totalorder (!%p1537_p8), %s1748_s24, 0 }
  0x66   : > { %1431 = dma.done.wait (%p1755_p4), %s231_s17, 128  }
  0x67   : > { %1433 = vsyncadd (%p1755_p4), %s231_s17, 4294967168  ;;  %p1756_p7 = scmp.eq.s32.totalorder %s1518_s22, 0 }
  0x69   : > { %1435 = dma.done.wait (%p1756_p7), [#allocation6], 8192   ;;  %p1757_p8 = pmov %p1756_p7 }
  0x6a   : > { %v1465_v0 = vmov 0   ;;  %v1220_v1 = vld [vmem:[#allocation5 + $0x4] ss:$16 sps:$4 sm:$0xff]   ;;  %v1222_v2 = vld [vmem:[#allocation5 + $0xc] ss:$16 sps:$4 sm:$0xff]   ;;  %s1101_s12 = sshll.u32 %s1518_s22, 7 }
  0x6b   : > { %1437 = vsyncadd (%p1757_p8), [#allocation6], 4294959104  ;;  %518 = vmatprep.mubr.bf16.mxu0 %v1465_v0  ;;  %559 = vmatprep.mubr.bf16.mxu1 %v1465_v0  ;;  %v1224_v3 = vld [vmem:[#allocation5] ss:$16 sps:$4 sm:$0xff]   ;;  %v1225_v4 = vld [vmem:[#allocation5 + $0x8] ss:$16 sps:$4 sm:$0xff]   ;;  %s1695_s8 = scalar_lea.hbm %s1744_s5, %s1101_s12 }
  0x6c   : > { %486 = vmatprep.subr.bf16.mxu0 %v1220_v1  ;;  %527 = vmatprep.subr.bf16.mxu1 %v1222_v2  ;;  %v1226_v5 = vld [vmem:[#allocation5 + $0x24] ss:$16 sps:$4 sm:$0xff]   ;;  %v1228_v6 = vld [vmem:[#allocation5 + $0x2c] ss:$16 sps:$4 sm:$0xff]   ;;  %v1230_v7 = vld [vmem:[#allocation5 + $0x20] ss:$16 sps:$4 sm:$0xff]  }
  0x6d   : > { %487 = vmatpush1.bf16.msra.mxu0 %v1224_v3  ;;  %528 = vmatpush1.bf16.msra.mxu1 %v1225_v4  ;;  %v1231_v8 = vld [vmem:[#allocation5 + $0x28] ss:$16 sps:$4 sm:$0xff]   ;;  %v1232_v9 = vld [vmem:[#allocation5 + $0x44] ss:$16 sps:$4 sm:$0xff]   ;;  %v1234_v10 = vld [vmem:[#allocation5 + $0x4c] ss:$16 sps:$4 sm:$0xff]   ;;  %v306_v3 = vlaneseq }
  0x6e   : > { %488 = vmatprep.subr.bf16.mxu0 %v1226_v5  ;;  %529 = vmatprep.subr.bf16.mxu1 %v1228_v6  ;;  %v1236_v11 = vld [vmem:[#allocation5 + $0x40] ss:$16 sps:$4 sm:$0xff]   ;;  %v1237_v12 = vld [vmem:[#allocation5 + $0x48] ss:$16 sps:$4 sm:$0xff]   ;;  %v1238_v13 = vld [vmem:[#allocation5 + $0x64] ss:$16 sps:$4 sm:$0xff]  }
  0x6f   : > { %v1240_v14 = vld [vmem:[#allocation5 + $0x6c] ss:$16 sps:$4 sm:$0xff]   ;;  %v1242_v15 = vld [vmem:[#allocation5 + $0x60] ss:$16 sps:$4 sm:$0xff]   ;;  %v1243_v16 = vld [vmem:[#allocation5 + $0x68] ss:$16 sps:$4 sm:$0xff]  }
  0x70   : > { %v1244_v17 = vld [vmem:[#allocation5 + $0x84] ss:$16 sps:$4 sm:$0xff]   ;;  %v1246_v18 = vld [vmem:[#allocation5 + $0x8c] ss:$16 sps:$4 sm:$0xff]   ;;  %v1248_v19 = vld [vmem:[#allocation5 + $0x80] ss:$16 sps:$4 sm:$0xff]  }
  0x71   : > { %489 = vmatpush1.bf16.msra.mxu0 %v1230_v7  ;;  %530 = vmatpush1.bf16.msra.mxu1 %v1231_v8  ;;  %v1249_v20 = vld [vmem:[#allocation5 + $0x88] ss:$16 sps:$4 sm:$0xff]   ;;  %v1250_v21 = vld [vmem:[#allocation5 + $0xa4] ss:$16 sps:$4 sm:$0xff]   ;;  %v1252_v22 = vld [vmem:[#allocation5 + $0xac] ss:$16 sps:$4 sm:$0xff]  }
  0x72   : > { %490 = vmatprep.subr.bf16.mxu0 %v1232_v9  ;;  %531 = vmatprep.subr.bf16.mxu1 %v1234_v10  ;;  %v1254_v23 = vld [vmem:[#allocation5 + $0xa0] ss:$16 sps:$4 sm:$0xff]   ;;  %v1255_v24 = vld [vmem:[#allocation5 + $0xa8] ss:$16 sps:$4 sm:$0xff]   ;;  %v1256_v25 = vld [vmem:[#allocation5 + $0xc4] ss:$16 sps:$4 sm:$0xff]  }
  0x73   : > { %v1258_v26 = vld [vmem:[#allocation5 + $0xcc] ss:$16 sps:$4 sm:$0xff]   ;;  %v1260_v27 = vld [vmem:[#allocation5 + $0xc0] ss:$16 sps:$4 sm:$0xff]   ;;  %v1261_v28 = vld [vmem:[#allocation5 + $0xc8] ss:$16 sps:$4 sm:$0xff]  }
  0x74   : > { %v1262_v29 = vld [vmem:[#allocation5 + $0xe4] ss:$16 sps:$4 sm:$0xff]   ;;  %v1264_v30 = vld [vmem:[#allocation5 + $0xec] ss:$16 sps:$4 sm:$0xff]   ;;  %v1266_v31 = vld [vmem:[#allocation5 + $0xe0] ss:$16 sps:$4 sm:$0xff]  }
  0x75   : > { %491 = vmatpush1.bf16.msra.mxu0 %v1236_v11  ;;  %532 = vmatpush1.bf16.msra.mxu1 %v1237_v12  ;;  %v1267_v32 = vld [vmem:[#allocation5 + $0xe8] ss:$16 sps:$4 sm:$0xff]   ;;  %v1268_v34 = vld [vmem:[#allocation7 + $0x40] sm:$0xff]   ;;  %v1276_v43 = vld [vmem:[#allocation7 + $0x50] sm:$0xff]   ;;  %v307_v4 = vshrl.u32 %v306_v3, 7  ;;  %s268_s13 = scalar_lea.vmem [#allocation8], %s1031_s15 }
  0x76   : > { %492 = vmatprep.subr.bf16.mxu0 %v1238_v13  ;;  %533 = vmatprep.subr.bf16.mxu1 %v1240_v14  ;;  %v270_v33 = vld [vmem:[%s1672_s23] sm:$0xff]  ;;  %v1269_v35 = vld [vmem:[#allocation7 + $0xc0] sm:$0xff]   ;;  %v1272_v39 = vld [vmem:[#allocation7 + $0x48] sm:$0xff]   ;;  %s934_s7 = sshll.u32 %s268_s13, 4  ;;  %s921_s9 = scalar_lea.sflag [#allocation4], %s1666_s14  ;;  %s1697_s7 = int_to_ptr.vmem [resolvable:$true] %s934_s7 }
  0x77   : > { %v1270_v36 = vld [vmem:[#allocation7] sm:$0xff]   ;;  %v271_v37 = vpack.c.bf16 %v270_v33, %v270_v33  ;;  %v1273_v40 = vld [vmem:[#allocation7 + $0xc8] sm:$0xff]   ;;  %v1277_v44 = vld [vmem:[#allocation7 + $0xd0] sm:$0xff]   ;;  %v308_v5 = vsub.s32 0, %v307_v4  ;;  %v316_v6 = vsub.s32 2, %v307_v4  ;;  %v312_v8 = vsub.s32 1, %v307_v4 }
  0x78   : > { %v1271_v38 = vld [vmem:[#allocation7 + $0x80] sm:$0xff]   ;;  %v1274_v41 = vld [vmem:[#allocation7 + $0x8] sm:$0xff]   ;;  %v1278_v45 = vld [vmem:[#allocation7 + $0x10] sm:$0xff]   ;;  %v320_v9 = vsub.s32 3, %v307_v4  ;;  %s1386_s11 = scalar_lea.vmem %s1697_s7, 128  ;;  %p1758_p0 = scmp.ne.s32.totalorder %s1753_s30, 0 }
  0x79   : > { %493 = vmatpush1.bf16.msra.mxu0 %v1242_v15  ;;  %534 = vmatpush1.bf16.msra.mxu1 %v1243_v16  ;;  %v1275_v42 = vld [vmem:[#allocation7 + $0x88] sm:$0xff]   ;;  %v1279_v46 = vld [vmem:[#allocation7 + $0x90] sm:$0xff]   ;;  %v1280_v47 = vld [vmem:[#allocation7 + $0x58] sm:$0xff]   ;;  %p1387_p11 = scmp.ne.s32.totalorder %s1697_s7, %s1386_s11  ;;  %s1466_s22 = smov [#allocation8]  }
  0x7a   : > { %494 = vmatprep.subr.bf16.mxu0 %v1244_v17  ;;  %535 = vmatprep.subr.bf16.mxu1 %v1246_v18  ;;  %v1281_v48 = vld [vmem:[#allocation7 + $0xd8] sm:$0xff]   ;;  %v1284_v51 = vld [vmem:[#allocation7 + $0x60] sm:$0xff]   ;;  %v1288_v55 = vld [vmem:[#allocation7 + $0x68] sm:$0xff]   ;;  %s1390_s15 = sshll.u32 %s1466_s22, 4  ;;  %s1391_s15 = int_to_ptr.vmem [resolvable:$false] %s1390_s15 }
  0x7b   : > { %v1282_v49 = vld [vmem:[#allocation7 + $0x18] sm:$0xff]   ;;  %v1285_v52 = vld [vmem:[#allocation7 + $0xe0] sm:$0xff]   ;;  %v1289_v56 = vld [vmem:[#allocation7 + $0xe8] sm:$0xff]   ;;  %p1388_p1 = pnand %p1387_p11, %p1758_p0  ;;  %s1392_s17 = scalar_lea.vmem %s1391_s15, 256 }
  0x7c   : > { %v1283_v50 = vld [vmem:[#allocation7 + $0x98] sm:$0xff]   ;;  %v1286_v53 = vld [vmem:[#allocation7 + $0x20] sm:$0xff]   ;;  %v1290_v57 = vld [vmem:[#allocation7 + $0x28] sm:$0xff]   ;;  %p1393_p5 = scmp.lt.s32.totalorder %s1697_s7, %s1391_s15  ;;  %p1394_p9 = scmp.lt.s32.totalorder %s1392_s17, %s1386_s11 }
  0x7d   : > { %495 = vmatpush1.bf16.msra.mxu0 %v1248_v19  ;;  %536 = vmatpush1.bf16.msra.mxu1 %v1249_v20  ;;  %v1287_v54 = vld [vmem:[#allocation7 + $0xa0] sm:$0xff]   ;;  %v1291_v58 = vld [vmem:[#allocation7 + $0xa8] sm:$0xff]   ;;  %v1292_v59 = vld [vmem:[#allocation7 + $0x70] sm:$0xff]   ;;  %p1389_p3 = pneg %p1388_p1 }
  0x7e   : > { %496 = vmatprep.subr.bf16.mxu0 %v1250_v21  ;;  %537 = vmatprep.subr.bf16.mxu1 %v1252_v22  ;;  %v1293_v60 = vld [vmem:[#allocation7 + $0xf0] sm:$0xff]   ;;  %v1296_v63 = vld [vmem:[#allocation7 + $0x78] sm:$0xff]   ;;  %p1395_p12 = por %p1394_p9, %p1393_p5 }
  0x7f   : > { %v1294_v61 = vld [vmem:[#allocation7 + $0x30] sm:$0xff]   ;;  %v1297_v0 = vld [vmem:[#allocation7 + $0xf8] sm:$0xff]  }
  0x80   : > { %v1295_v62 = vld [vmem:[#allocation7 + $0xb0] sm:$0xff]   ;;  %v1298_v1 = vld [vmem:[#allocation7 + $0x38] sm:$0xff]   ;;  %p1396_p2 = pnand %p1395_p12, %p1389_p3 }
  0x81   : > { %497 = vmatpush1.bf16.msra.mxu0 %v1254_v23  ;;  %538 = vmatpush1.bf16.msra.mxu1 %v1255_v24  ;;  %v1299_v2 = vld [vmem:[#allocation7 + $0xb8] sm:$0xff]   ;;  %v304_v7 = vld [vmem:[%s1741_s2] sm:$0xf] }
  0x82   : > { %498 = vmatprep.subr.bf16.mxu0 %v1256_v25  ;;  %539 = vmatprep.subr.bf16.mxu1 %v1258_v26  ;;  %v309_v10 = vrot.slane %v304_v7, %v308_v5  ;;  %v317_v11 = vrot.slane %v304_v7, %v316_v6  ;;  %v313_v12 = vrot.slane %v304_v7, %v312_v8 }
  0x83   : > { %v321_v13 = vrot.slane %v304_v7, %v320_v9 }
  0x85   : > { %499 = vmatpush1.bf16.msra.mxu0 %v1260_v27  ;;  %540 = vmatpush1.bf16.msra.mxu1 %v1261_v28 }
  0x86   : > { %500 = vmatprep.subr.bf16.mxu0 %v1262_v29  ;;  %541 = vmatprep.subr.bf16.mxu1 %v1264_v30 }
  0x89   : > { %501 = vmatpush1.bf16.msra.mxu0 %v1266_v31  ;;  %542 = vmatpush1.bf16.msra.mxu1 %v1267_v32 }
  0x8a   : > { %1104 = vmatprep.subr.bf16.mxu0 %v1268_v34  ;;  %1126 = vmatprep.subr.bf16.mxu1 %v1269_v35 }
  0x8c   : > { %519 = vmatmul.mubr.bf16.vlgmr.msra.gmra.mrb[0].mxu0 %v271_v37  ;;  %560 = vmatmul.mubr.bf16.vlgmr.msra.gmra.mrb[0].mxu1 %v271_v37 }
  0x8d   : > { %1105 = vmatpush3.bf16.msra.mxu0 %v1270_v36  ;;  %1127 = vmatpush3.bf16.msra.mxu1 %v1271_v38  ;;  %v1067_v36 = vld [vmem:[%s1743_s4] ss:$0 sm:$0xff] }
  0x8e   : > { %1106 = vmatprep.subr.bf16.mxu0 %v1272_v39  ;;  %1128 = vmatprep.subr.bf16.mxu1 %v1273_v40 }
  0x91   : > { %1107 = vmatpush3.bf16.msra.mxu0 %v1274_v41  ;;  %1129 = vmatpush3.bf16.msra.mxu1 %v1275_v42 }
  0x92   : > { %1108 = vmatprep.subr.bf16.mxu0 %v1276_v43  ;;  %1130 = vmatprep.subr.bf16.mxu1 %v1277_v44 }
  0x95   : > { %1109 = vmatpush3.bf16.msra.mxu0 %v1278_v45  ;;  %1131 = vmatpush3.bf16.msra.mxu1 %v1279_v46 }
  0x96   : > { %1110 = vmatprep.subr.bf16.mxu0 %v1280_v47  ;;  %1132 = vmatprep.subr.bf16.mxu1 %v1281_v48 }
  0x99   : > { %1111 = vmatpush3.bf16.msra.mxu0 %v1282_v49  ;;  %1133 = vmatpush3.bf16.msra.mxu1 %v1283_v50 }
  0x9a   : > { %1112 = vmatprep.subr.bf16.mxu0 %v1284_v51  ;;  %1134 = vmatprep.subr.bf16.mxu1 %v1285_v52 }
  0x9d   : > { %1113 = vmatpush3.bf16.msra.mxu0 %v1286_v53  ;;  %1135 = vmatpush3.bf16.msra.mxu1 %v1287_v54 }
  0x9e   : > { %1114 = vmatprep.subr.bf16.mxu0 %v1288_v55  ;;  %1136 = vmatprep.subr.bf16.mxu1 %v1289_v56 }
  0xa1   : > { %1115 = vmatpush3.bf16.msra.mxu0 %v1290_v57  ;;  %1137 = vmatpush3.bf16.msra.mxu1 %v1291_v58 }
  0xa2   : > { %1116 = vmatprep.subr.bf16.mxu0 %v1292_v59  ;;  %1138 = vmatprep.subr.bf16.mxu1 %v1293_v60 }
  0xa5   : > { %1117 = vmatpush3.bf16.msra.mxu0 %v1294_v61  ;;  %1139 = vmatpush3.bf16.msra.mxu1 %v1295_v62 }
  0xa6   : > { %1118 = vmatprep.subr.bf16.mxu0 %v1296_v63  ;;  %1140 = vmatprep.subr.bf16.mxu1 %v1297_v0 }
  0xa9   : > { %1119 = vmatpush3.bf16.msra.mxu0 %v1298_v1  ;;  %1141 = vmatpush3.bf16.msra.mxu1 %v1299_v2 }
 0x15f   : > { %v520_v14 = vpop.f32.mrb[0].mxu0  ;;  %v561_v15 = vpop.f32.mrb[0].mxu1 }
 0x160   : > { %v521_v16 = vadd.f32 %v520_v14, %v309_v10  ;;  %v562_v17 = vadd.f32 %v561_v15, %v317_v11  ;;  %v522_v18 = vpop.f32.mrb[1].mxu0  ;;  %v563_v19 = vpop.f32.mrb[1].mxu1 }
 0x161   : > { %v523_v20 = vadd.f32 %v522_v18, %v313_v12  ;;  %v564_v21 = vadd.f32 %v563_v19, %v321_v13  ;;  %v524_v22 = vpop.f32.mrb[2].mxu0  ;;  %v565_v23 = vpop.f32.mrb[2].mxu1 }
 0x162   : > { %v568_v24 = vmax.f32 %v521_v16, 0.0  ;;  %v570_v25 = vmax.f32 %v562_v17, 0.0  ;;  %v525_v26 = vpop.f32.mrb[3].mxu0  ;;  %v566_v27 = vpop.f32.mrb[3].mxu1 }
 0x163   : > { %v569_v28 = vmax.f32 %v523_v20, 0.0  ;;  %v571_v29 = vmax.f32 %v564_v21, 0.0 }
 0x164   : > { %v574_v30 = vpack.c.bf16 %v570_v25, %v570_v25  ;;  %v572_v33 = vpack.c.bf16 %v568_v24, %v568_v24 }
 0x165   : > { %v573_v31 = vpack.c.bf16 %v569_v28, %v569_v28  ;;  %v575_v32 = vpack.c.bf16 %v571_v29, %v571_v29 }
 0x167   : > { %871 = vmatprep.mubr.bf16.mxu0 %v573_v31  ;;  %911 = vmatprep.mubr.bf16.mxu1 %v575_v32 }
 0x168   : > { %872 = vmatmul.mubr.bf16.vlgmr.msra.gmra.mrb[4].mxu0 %v572_v33  ;;  %912 = vmatmul.mubr.bf16.vlgmr.msra.gmra.mrb[4].mxu1 %v574_v30 }
 0x23b   : > { %v1120_v34 = vpop.f32.mrb[4].mxu0  ;;  %v1142_v35 = vpop.f32.mrb[4].mxu1 }
 0x23c   : > { %v1121_v37 = vpop.f32.mrb[5].mxu0  ;;  %v1143_v38 = vpop.f32.mrb[5].mxu1 }
 0x23d   : > { %v1122_v39 = vadd.f32 %v1121_v37, %v1120_v34  ;;  %v1144_v40 = vadd.f32 %v1143_v38, %v1142_v35  ;;  %v1123_v41 = vpop.f32.mrb[6].mxu0  ;;  %v1145_v42 = vpop.f32.mrb[6].mxu1 }
 0x23e   : > { %v1124_v43 = vpop.f32.mrb[7].mxu0  ;;  %v1146_v44 = vpop.f32.mrb[7].mxu1 }
 0x23f   : > { %v874_v45 = vadd.f32 %v1122_v39, %v1067_v36 }
 0x241   : > { %v914_v46 = vadd.f32 %v1144_v40, %v874_v45 }
 0x243   : > { %919 = vst [vmem:[%s268_s13] sm:$0xff] %v914_v46 }
 0x244   : > { %1399 = shalt.err (!%p1396_p2)
}
 0x245   : > { %s1400_s14 = scalar_lea.hbm %s1695_s8, 128  ;;  %s1404_s26 = scalar_lea.hbm %s1744_s5, 256 }
 0x246   : > { %p1401_p13 = scmp.ne.s32.totalorder %s1695_s8, %s1400_s14  ;;  %p1405_p4 = scmp.lt.u32.totalorder %s1695_s8, %s1744_s5 }
 0x247   : > { %p1406_p7 = scmp.lt.u32.totalorder %s1404_s26, %s1400_s14  ;;  %p1408_p11 = scmp.lt.u32.totalorder %s1400_s14, %s1695_s8 }
 0x248   : > { %p1402_p6 = pnand %p1401_p13, %p1758_p0 }
 0x249   : > { %p1407_p8 = por %p1406_p7, %p1405_p4 }
 0x24a   : > { %p1403_p10 = pneg %p1402_p6 }
 0x24b   : > { %p1409_p1 = por %p1408_p11, %p1407_p8 }
 0x24d   : > { %p1410_p3 = pnand %p1409_p1, %p1403_p10 }
 0x24f   : > { %1413 = shalt.err (!%p1410_p3)
}
 0x250   : > { %1158 = dma.vmem_to_hbm [thread:$0]  (%p1758_p0), %s1697_s7, 128, %s1695_s8, %s921_s9  }
 0x251 PF: > { %s946_s12 = sand.u32 1, %s1444_s18   ;;  %p1759_p5 = scmp.ne.s32.totalorder %s1749_s25, 0 }
 0x252   : > { %p1760_p9 = scmp.ge.s32.totalorder %s1456_s21, 2  ;;  %s947_s13 = scalar_lea.sflag [#allocation4], %s946_s12 }
 0x254   : > { %p1172_p12 = pnand %p1760_p9, %p1759_p5 }
 0x256   : > { %1439 = dma.done.wait (!%p1172_p12), %s947_s13, 128  }
 0x257   : > { %1441 = vsyncadd (!%p1172_p12), %s947_s13, 4294967168  ;;  %p19_p2 = scmp.ge.s32.totalorder %s1607_s16, 4   ;;  %s1761_s18 = smov %s1448_s19 }
 0x258   : > { %s1762_s19 = smov %s1452_s20  ;;  %s1763_s20 = smov %s1616_s27 }
 0x259   : > { %s1764_s21 = smov %s1607_s16  ;;  %21 = sbr.rel (!%p19_p2) target bundleno = 6 (0x6), region = 93 }
 0x260   :  { %952 = vsyncpa [#allocation3], 1 }
 0x261   :  { %954 = vsyncpa [#allocation3 + $0x1], 1 }
 0x262   :  { %955 = vsyncpa [#allocation6], 1 }
 0x263   :  { %956 = vsyncpa [#allocation4], 1 }
 0x264   :  { %958 = vsyncpa [#allocation4 + $0x1], 1 }

</bundles_post_ra>
